<compile_context>
chip_gen: v6e
topology: v6e:2x2x1
jax: 0.10.0
libtpu: 0.0.40
codegen_flags: <defaults>
</compile_context>

<pallas_src>
import jax
import jax.numpy as jnp
from jax.experimental import pallas as pl
from jax.experimental.pallas import tpu as pltpu


def _fused_kernel(x_ref, wb_ref, o_ref):
    # All refs are 1-D SMEM (scalar path only; no vector ops emitted):
    #   x_ref : SMEM (4,)  flattened x, x[0, c, t] == x_ref[2*c + t]
    #   wb_ref: SMEM (6,)  [w00, w01, w10, w11, b0, b1]  (W is (out_f, in_f))
    #   o_ref : SMEM (4,)  flattened out, out[0, t, j] == o_ref[2*t + j]
    x00 = x_ref[0]   # x[0, c=0, t=0]
    x01 = x_ref[1]   # x[0, c=0, t=1]
    x10 = x_ref[2]   # x[0, c=1, t=0]
    x11 = x_ref[3]   # x[0, c=1, t=1]

    w00 = wb_ref[0]
    w01 = wb_ref[1]
    w10 = wb_ref[2]
    w11 = wb_ref[3]
    b0 = wb_ref[4]
    b1 = wb_ref[5]

    # Fused permute + linear (scalar MACs; MXU is the wrong tool at 2x2):
    #   v2[0, t, j] = sum_c x[0, c, t] * W[j, c] + b[j]
    v2_t0_j0 = x00 * w00 + x10 * w01 + b0
    v2_t0_j1 = x00 * w10 + x10 * w11 + b1
    v2_t1_j0 = x01 * w00 + x11 * w01 + b0
    v2_t1_j1 = x01 * w10 + x11 * w11 + b1

    # max / argmax over the out-feature axis (size 2); first index wins ties.
    max_t0 = jnp.maximum(v2_t0_j0, v2_t0_j1)
    max_t1 = jnp.maximum(v2_t1_j0, v2_t1_j1)
    am0 = jnp.where(v2_t0_j1 > v2_t0_j0, 1.0, 0.0)   # argmax at t=0 (aligns with j=0)
    am1 = jnp.where(v2_t1_j1 > v2_t1_j0, 1.0, 0.0)   # argmax at t=1 (aligns with j=1)

    # mask[0, t, j] = (max[0, t] + am[j]) > 0   (torch's broadcast aligns the
    # argmax's t-axis with the output-feature axis j; valid since B==1, T==F==2)
    # Fold mask cast + multiply into a single select per output scalar.
    o_ref[0] = jnp.where(max_t0 + am0 > 0.0, v2_t0_j0, 0.0)   # out[0, 0, 0]
    o_ref[1] = jnp.where(max_t0 + am1 > 0.0, v2_t0_j1, 0.0)   # out[0, 0, 1]
    o_ref[2] = jnp.where(max_t1 + am0 > 0.0, v2_t1_j0, 0.0)   # out[0, 1, 0]
    o_ref[3] = jnp.where(max_t1 + am1 > 0.0, v2_t1_j1, 0.0)   # out[0, 1, 1]


@jax.jit
def fused_permute_linear_mask(x, w, b):
    """x: (B, C, T)=(1,2,2), w: (2,2), b: (2,).  Returns (B, T, 2)."""
    B, C, T = x.shape
    F = w.shape[0]
    assert (B, C, T, F) == (1, 2, 2, 2), "kernel specialized to the module's shapes"

    x_flat = x.reshape(-1)                          # (4,) — contiguous, free
    wb = jnp.concatenate([w.reshape(-1), b])        # (6,) — one SMEM arg, one DMA

    out_flat = pl.pallas_call(
        _fused_kernel,
        out_shape=jax.ShapeDtypeStruct((B * T * F,), x.dtype),
        in_specs=[
            pl.BlockSpec(memory_space=pltpu.MemorySpace.SMEM),   # x  (4 scalars)
            pl.BlockSpec(memory_space=pltpu.MemorySpace.SMEM),   # w|b (6 scalars)
        ],
        out_specs=pl.BlockSpec(memory_space=pltpu.MemorySpace.SMEM),
    )(x_flat, wb)
    return out_flat.reshape(B, T, F)                # contiguous, free


def _reference(x, w, b):
    """Pure-JAX mirror of the (intended) torch forward."""
    v1 = jnp.transpose(x, (0, 2, 1))                 # (B, T, C)
    v2 = v1 @ w.T + b                                # (B, T, F)
    v3 = jnp.max(v2, axis=-1)                        # (B, T)
    v4 = jnp.argmax(v2, axis=-1)                     # (B, T)
    v4 = v4[None]                                    # (1, B, T)
    v3 = v3[..., None]                               # (B, T, 1)
    v3 = jnp.tile(v3, (1, 1, 2))                     # (B, T, 2)
    v3 = v3 + v4.astype(v3.dtype)                    # broadcast (B == 1)
    mask = (v3 > 0).astype(x.dtype)
    return v2 * mask


if __name__ == "__main__":
    key = jax.random.PRNGKey(0)
    kx, kw, kb = jax.random.split(key, 3)

    # deterministic inputs / parameters (nn.Linear(2,2)-style uniform init)
    x1 = jax.random.normal(kx, (1, 2, 2), dtype=jnp.float32)
    bound = 1.0 / (2.0 ** 0.5)
    w = jax.random.uniform(kw, (2, 2), jnp.float32, -bound, bound)
    b = jax.random.uniform(kb, (2,), jnp.float32, -bound, bound)

    out = fused_permute_linear_mask(x1, w, b)
    out = jax.block_until_ready(out)

    ref = _reference(x1, w, b)
    assert out.shape == ref.shape == (1, 2, 2)
    assert jnp.allclose(out, ref, atol=1e-6), (out, ref)

    # extra check: exact ties in the logits (argmax must pick index 0)
    w_tie = jnp.array([[0.5, 0.25], [0.5, 0.25]], dtype=jnp.float32)
    b_tie = jnp.array([0.1, 0.1], dtype=jnp.float32)
    out_tie = jax.block_until_ready(fused_permute_linear_mask(x1, w_tie, b_tie))
    assert jnp.allclose(out_tie, _reference(x1, w_tie, b_tie), atol=1e-6)

    # one more: force an all-negative masked-out case
    w_neg = -jnp.abs(w) - 1.0
    b_neg = jnp.array([-3.0, -3.0], dtype=jnp.float32)
    out_neg = jax.block_until_ready(fused_permute_linear_mask(x1, w_neg, b_neg))
    assert jnp.allclose(out_neg, _reference(x1, w_neg, b_neg), atol=1e-6)

    print("KERNEL_OK")
</pallas_src>

<mosaic_0001>
module attributes {stable_mosaic.version = 11 : i64} {
  func.func @_fused_kernel(%arg0: memref<4xf32, #tpu.memory_space<smem>>, %arg1: memref<6xf32, #tpu.memory_space<smem>>, %arg2: memref<4xf32, #tpu.memory_space<smem>>) attributes {dimension_semantics = [], scalar_prefetch = 0 : i64, scratch_operands = 0 : i64, tpu.core_type = #tpu.core_type<tc>} {
    %c0 = arith.constant 0 : index
    %0 = memref.load %arg0[%c0] : memref<4xf32, #tpu.memory_space<smem>>
    %c1 = arith.constant 1 : index
    %1 = memref.load %arg0[%c1] : memref<4xf32, #tpu.memory_space<smem>>
    %c2 = arith.constant 2 : index
    %2 = memref.load %arg0[%c2] : memref<4xf32, #tpu.memory_space<smem>>
    %c3 = arith.constant 3 : index
    %3 = memref.load %arg0[%c3] : memref<4xf32, #tpu.memory_space<smem>>
    %c0_0 = arith.constant 0 : index
    %4 = memref.load %arg1[%c0_0] : memref<6xf32, #tpu.memory_space<smem>>
    %c1_1 = arith.constant 1 : index
    %5 = memref.load %arg1[%c1_1] : memref<6xf32, #tpu.memory_space<smem>>
    %c2_2 = arith.constant 2 : index
    %6 = memref.load %arg1[%c2_2] : memref<6xf32, #tpu.memory_space<smem>>
    %c3_3 = arith.constant 3 : index
    %7 = memref.load %arg1[%c3_3] : memref<6xf32, #tpu.memory_space<smem>>
    %c4 = arith.constant 4 : index
    %8 = memref.load %arg1[%c4] : memref<6xf32, #tpu.memory_space<smem>>
    %c5 = arith.constant 5 : index
    %9 = memref.load %arg1[%c5] : memref<6xf32, #tpu.memory_space<smem>>
    %10 = arith.mulf %0, %4 : f32
    %11 = arith.mulf %2, %5 : f32
    %12 = arith.addf %10, %11 : f32
    %13 = arith.addf %12, %8 : f32
    %14 = arith.mulf %0, %6 : f32
    %15 = arith.mulf %2, %7 : f32
    %16 = arith.addf %14, %15 : f32
    %17 = arith.addf %16, %9 : f32
    %18 = arith.mulf %1, %4 : f32
    %19 = arith.mulf %3, %5 : f32
    %20 = arith.addf %18, %19 : f32
    %21 = arith.addf %20, %8 : f32
    %22 = arith.mulf %1, %6 : f32
    %23 = arith.mulf %3, %7 : f32
    %24 = arith.addf %22, %23 : f32
    %25 = arith.addf %24, %9 : f32
    %26 = arith.maximumf %13, %17 : f32
    %27 = arith.maximumf %21, %25 : f32
    %28 = arith.cmpf ogt, %17, %13 : f32
    %cst = arith.constant 1.000000e+00 : f32
    %cst_4 = arith.constant 0.000000e+00 : f32
    %29 = arith.select %28, %cst, %cst_4 : f32
    %30 = arith.cmpf ogt, %25, %21 : f32
    %cst_5 = arith.constant 1.000000e+00 : f32
    %cst_6 = arith.constant 0.000000e+00 : f32
    %31 = arith.select %30, %cst_5, %cst_6 : f32
    %32 = arith.addf %26, %29 : f32
    %cst_7 = arith.constant 0.000000e+00 : f32
    %33 = arith.cmpf ogt, %32, %cst_7 : f32
    %cst_8 = arith.constant 0.000000e+00 : f32
    %34 = arith.select %33, %13, %cst_8 : f32
    %c0_9 = arith.constant 0 : index
    %35 = memref.load %arg2[%c0_9] : memref<4xf32, #tpu.memory_space<smem>>
    memref.store %34, %arg2[%c0_9] : memref<4xf32, #tpu.memory_space<smem>>
    %36 = arith.addf %26, %31 : f32
    %cst_10 = arith.constant 0.000000e+00 : f32
    %37 = arith.cmpf ogt, %36, %cst_10 : f32
    %cst_11 = arith.constant 0.000000e+00 : f32
    %38 = arith.select %37, %17, %cst_11 : f32
    %c1_12 = arith.constant 1 : index
    %39 = memref.load %arg2[%c1_12] : memref<4xf32, #tpu.memory_space<smem>>
    memref.store %38, %arg2[%c1_12] : memref<4xf32, #tpu.memory_space<smem>>
    %40 = arith.addf %27, %29 : f32
    %cst_13 = arith.constant 0.000000e+00 : f32
    %41 = arith.cmpf ogt, %40, %cst_13 : f32
    %cst_14 = arith.constant 0.000000e+00 : f32
    %42 = arith.select %41, %21, %cst_14 : f32
    %c2_15 = arith.constant 2 : index
    %43 = memref.load %arg2[%c2_15] : memref<4xf32, #tpu.memory_space<smem>>
    memref.store %42, %arg2[%c2_15] : memref<4xf32, #tpu.memory_space<smem>>
    %44 = arith.addf %27, %31 : f32
    %cst_16 = arith.constant 0.000000e+00 : f32
    %45 = arith.cmpf ogt, %44, %cst_16 : f32
    %cst_17 = arith.constant 0.000000e+00 : f32
    %46 = arith.select %45, %25, %cst_17 : f32
    %c3_18 = arith.constant 3 : index
    %47 = memref.load %arg2[%c3_18] : memref<4xf32, #tpu.memory_space<smem>>
    memref.store %46, %arg2[%c3_18] : memref<4xf32, #tpu.memory_space<smem>>
    return
  }
}

</mosaic_0001>

<bundles_post_ra>
// kernel: fused_permute_linear_mask.1
= control target key start
LH: loop header
LB: loop body
LE: loop exit
PB: predicated region body
PF: predicated region fallthrough
CT: control target
= control target key end

     0   :  { %7 = vsyncpa [#allocation3], 0  ;;  %s186_s0 = inlined_call_operand.vmem [shape: f32[4], index: 0, kind: input, shape index: {}]   ;;  %s187_s1 = inlined_call_operand.vmem [shape: f32[6], index: 1, kind: input, shape index: {}]   ;;  %s188_s2 = inlined_call_operand.vmem [shape: f32[4], index: 2, kind: output, shape index: {}]  }
   0x1   :  { %8 = vsyncpa [#allocation6], 0 }
   0x2   :  { %9 = vsyncpa [#allocation4], 0  ;;  %s16_s11 = sshll.u32 %s186_s0, 4  ;;  %s26_s14 = sshll.u32 %s187_s1, 4  ;;  %s17_s11 = int_to_ptr.vmem [resolvable:$true] %s16_s11  ;;  %s27_s14 = int_to_ptr.vmem [resolvable:$true] %s26_s14 }
   0x3   :  { %s117_s15 = scalar_lea.vmem %s17_s11, 16  ;;  %p122_p1 = scmp.lt.s32.totalorder %s17_s11, %s17_s11 }
   0x4   :  { %p118_p0 = scmp.ne.s32.totalorder %s17_s11, %s117_s15  ;;  %p123_p2 = scmp.lt.s32.totalorder %s117_s15, %s117_s15 }
   0x6   :  { %p124_p3 = por %p123_p2, %p122_p1 }
   0x8   :  { %p125_p4 = pnand %p124_p3, %p118_p0 }
   0xa   :  { %128 = shalt.err (!%p125_p4)
}
   0xb   :  { %s159_s16 = smov [#allocation2]   ;;  %s129_s17 = scalar_lea.vmem %s27_s14, 16 }
   0xc   :  { %19 = dma.vmem_to_smem %s17_s11, 16, %s159_s16, [#allocation3]  }
   0xd   :  { %p130_p5 = scmp.ne.s32.totalorder %s27_s14, %s129_s17  ;;  %p134_p6 = scmp.lt.s32.totalorder %s27_s14, %s27_s14 }
   0xe   :  { %p135_p7 = scmp.lt.s32.totalorder %s129_s17, %s129_s17 }
  0x10   :  { %p136_p8 = por %p135_p7, %p134_p6 }
  0x12   :  { %p137_p9 = pnand %p136_p8, %p130_p5 }
  0x14   :  { %140 = shalt.err (!%p137_p9)
}
  0x15   :  { %s160_s0 = smov [#allocation5]  }
  0x16   :  { %29 = dma.vmem_to_smem %s27_s14, 16, %s160_s0, [#allocation6]  }
  0x17   :  { %153 = dma.done.wait [#allocation3], 16  }
  0x18   :  { %154 = vsyncadd [#allocation3], 4294967280 }
  0x19   :  { %155 = dma.done.wait [#allocation6], 16  }
  0x1a   :  { %156 = vsyncadd [#allocation6], 4294967280 }
  0x1b   :  { %36 = sfence }
  0x1c   :  { %s37_s1 = sld [smem:[#allocation2]] }
  0x1d   :  { %s106_s18 = sld [smem:[#allocation2 + $0x1]] }
  0x1e   :  { %s107_s19 = sld [smem:[#allocation2 + $0x2]] }
  0x1f   :  { %s108_s20 = sld [smem:[#allocation2 + $0x3]] }
  0x20   :  { %s41_s21 = sld [smem:[#allocation5]] }
  0x21   :  { %s109_s22 = sld [smem:[#allocation5 + $0x1]] }
  0x22   :  { %s110_s23 = sld [smem:[#allocation5 + $0x2]] }
  0x23   :  { %s111_s24 = sld [smem:[#allocation5 + $0x3]] }
  0x24   :  { %s112_s25 = sld [smem:[#allocation5 + $0x4]] }
  0x25   :  { %s113_s26 = sld [smem:[#allocation5 + $0x5]] }
  0x26   :  { %s47_s27 = smul.f32 %s41_s21, %s37_s1 }
  0x27   :  { %s48_s28 = smul.f32 %s109_s22, %s107_s19 }
  0x28   :  { %s51_s29 = smul.f32 %s110_s23, %s37_s1 }
  0x29   :  { %s49_s30 = sadd.f32 %s48_s28, %s47_s27  ;;  %s52_s3 = smul.f32 %s111_s24, %s107_s19 }
  0x2a   :  { %s55_s4 = smul.f32 %s106_s18, %s41_s21 }
  0x2b   :  { %s50_s5 = sadd.f32 %s112_s25, %s49_s30  ;;  %s56_s6 = smul.f32 %s109_s22, %s108_s20 }
  0x2c   :  { %s53_s7 = sadd.f32 %s52_s3, %s51_s29  ;;  %s59_s8 = smul.f32 %s110_s23, %s106_s18 }
  0x2d   :  { %s57_s9 = sadd.f32 %s56_s6, %s55_s4  ;;  %s60_s10 = smul.f32 %s111_s24, %s108_s20 }
  0x2e   :  { %s54_s11 = sadd.f32 %s113_s26, %s53_s7  ;;  %s95_s23 = sshll.u32 %s188_s2, 4  ;;  %s96_s23 = int_to_ptr.vmem [resolvable:$true] %s95_s23 }
  0x2f   :  { %s58_s12 = sadd.f32 %s112_s25, %s57_s9  ;;  %s141_s24 = scalar_lea.vmem %s96_s23, 16 }
  0x30   :  { %s61_s13 = sadd.f32 %s60_s10, %s59_s8  ;;  %p65_p10 = scmp.gt.f32.partialorder %s54_s11, %s50_s5 }
  0x31   :  { %s63_s15 = smax.f32 %s54_s11, %s50_s5  ;;  %p142_p2 = scmp.ne.s32.totalorder %s96_s23, %s141_s24 }
  0x32   :  { %s62_s14 = sadd.f32 %s113_s26, %s61_s13  ;;  %p146_p3 = scmp.lt.s32.totalorder %s96_s23, %s96_s23 }
  0x33   :  { %s66_s16 = scalar_select %p65_p10, 1.0, 0.0 }
  0x34   :  { %s64_s17 = smax.f32 %s62_s14, %s58_s12  ;;  %p67_p11 = scmp.gt.f32.partialorder %s62_s14, %s58_s12 }
  0x35   :  { %s69_s0 = sadd.f32 %s66_s16, %s63_s15  ;;  %p147_p4 = scmp.lt.s32.totalorder %s141_s24, %s141_s24 }
  0x36   :  { %s68_s1 = scalar_select %p67_p11, 1.0, 0.0 }
  0x37   :  { %p70_p12 = scmp.gt.f32.partialorder %s69_s0, 0.0  ;;  %s79_s19 = sadd.f32 %s66_s16, %s64_s17 }
  0x38   :  { %s74_s21 = sadd.f32 %s68_s1, %s63_s15  ;;  %p148_p5 = por %p147_p4, %p146_p3 }
  0x39   :  { %s190_s5 = smov (!%p70_p12, %s50_s5), 0.0  ;;  %p80_p0 = scmp.gt.f32.partialorder %s79_s19, 0.0 }
  0x3a   :  { %p75_p13 = scmp.gt.f32.partialorder %s74_s21, 0.0  ;;  %73 = sst [smem:[#allocation7]] %s190_s5 }
  0x3b   :  { %s194_s12 = smov (!%p80_p0, %s58_s12), 0.0  ;;  %s84_s18 = sadd.f32 %s68_s1, %s64_s17 }
  0x3c   :  { %s192_s11 = smov (!%p75_p13, %s54_s11), 0.0  ;;  %83 = sst [smem:[#allocation7 + $0x2]] %s194_s12 }
  0x3d   :  { %78 = sst [smem:[#allocation7 + $0x1]] %s192_s11  ;;  %p85_p1 = scmp.gt.f32.partialorder %s84_s18, 0.0 }
  0x3e   :  { %p149_p6 = pnand %p148_p5, %p142_p2 }
  0x3f   :  { %s196_s14 = smov (!%p85_p1, %s62_s14), 0.0 }
  0x40   :  { %88 = sst [smem:[#allocation7 + $0x3]] %s196_s14 }
  0x41   :  { %152 = shalt.err (!%p149_p6)
}
  0x42   :  { %s161_s25 = smov [#allocation7]  }
  0x43   :  { %98 = dma.smem_to_vmem %s161_s25, 16, %s96_s23, [#allocation4]  }
  0x44   :  { %157 = dma.done.wait [#allocation4], 16  }
  0x45   :  { %158 = vsyncadd [#allocation4], 4294967280 }
  0x46   :  { %102 = sfence }
  0x47   :  { %103 = vsyncpa [#allocation3], 1 }
  0x48   :  { %104 = vsyncpa [#allocation6], 1 }
  0x49   :  { %105 = vsyncpa [#allocation4], 1 }

</bundles_post_ra>
